<compile_context>
chip_gen: v7x
topology: tpu7x:2x2x1
jax: 0.10.0
libtpu: 0.0.40
codegen_flags: <defaults>
</compile_context>

<pallas_src>
import functools

import jax
import jax.numpy as jnp
from jax.experimental import pallas as pl
from jax.experimental.pallas import tpu as pltpu


def _round_up(x: int, m: int) -> int:
    return ((x + m - 1) // m) * m


def _reference_forward(context, params):
    """Pure-JAX reference (also the small-batch / degenerate fallback)."""
    x = context
    for (w, b) in params[:-1]:
        x = jnp.maximum(
            jnp.dot(x, w, precision=jax.lax.Precision.HIGHEST) + b, 0.0)
    w_out, b_out = params[-1]
    pred = jnp.dot(x, w_out, precision=jax.lax.Precision.HIGHEST) + b_out
    return dict(x=x, pred_rewards=pred)


def _fused_mlp_kernel(*refs, num_layers, dout_padded, hidden_width,
                      compute_dtype):
    """refs = (ctx_ref, w_0 ... w_{L-1}, bias_ref, out_slab_ref).

    out_slab layout (all boundaries are multiples of 128 lanes):
      [:, :hidden_width]   -> last hidden activation `x` (zero-padded lanes)
      [:, hidden_width:]   -> pred_rewards              (zero-padded lanes)
    """
    ctx_ref = refs[0]
    w_refs = refs[1:1 + num_layers]
    b_ref = refs[1 + num_layers]
    out_ref = refs[2 + num_layers]

    x = ctx_ref[...]
    if x.dtype != compute_dtype:
        x = x.astype(compute_dtype)

    # Statically unrolled layer loop; intermediates live in vregs/VMEM.
    for layer in range(num_layers):
        dout_p = dout_padded[layer]
        y = jnp.dot(x, w_refs[layer][...],
                    preferred_element_type=jnp.float32)          # f32 acc
        y = y + b_ref[layer:layer + 1, :dout_p]                  # f32 bias
        if layer < num_layers - 1:
            y = jnp.maximum(y, 0.0)                              # ReLU
            # TODO(synk): training-mode dropout (dropout_p) not implemented;
            #             eval/inference semantics only.
            x = y.astype(compute_dtype)
            if layer == num_layers - 2:                          # last hidden
                out_ref[:, :hidden_width] = x.astype(out_ref.dtype)
        else:                                                    # output layer
            out_ref[:, hidden_width:] = y.astype(out_ref.dtype)


def rms_neural_model_forward(context, params, *, pallas_min_batch=256):
    """Fused Pallas implementation of RMSNeuralModel.forward (eval mode).

    Args:
      context: (batch, context_dim) array (f32 or bf16).
      params:  list of (w, b) with w: (din, dout) (i.e. transposed vs.
               PyTorch's nn.Linear.weight) and b: (dout,).
      pallas_min_batch: batches smaller than this use a plain XLA dot chain
               (a fused kernel's launch/DMA fixed cost dominates there).

    Returns:
      dict(x=last_hidden, pred_rewards=final_linear_output)
    """
    batch, context_dim = context.shape
    num_layers = len(params)

    # Tiny / degenerate cases: plain XLA wins on fixed cost.
    if num_layers < 2 or batch < pallas_min_batch:
        return _reference_forward(context, params)

    dims = [context_dim] + [int(w.shape[1]) for (w, _) in params]
    last_hidden = dims[-2]
    n_actions = dims[-1]
    compute_dtype = context.dtype
    out_dtype = context.dtype

    # Pad every layer's output width to a multiple of 128 (full vreg lanes).
    dout_padded = tuple(_round_up(d, 128) for d in dims[1:])
    din_padded = (context_dim,) + dout_padded[:-1]
    hp = dout_padded[-2]          # padded last-hidden width
    ap = dout_padded[-1]          # padded n_actions width
    dmax = max(dout_padded)
    slab_w = hp + ap

    # Host-side packing: zero-pad weights, stack biases into one f32 matrix,
    # cast weights to the compute dtype (bf16 context keeps bf16 MXU operands).
    padded_ws = []
    bias_mat = jnp.zeros((num_layers, dmax), jnp.float32)
    for i, (w, b) in enumerate(params):
        din, dout = w.shape
        wp = jnp.zeros((din_padded[i], dout_padded[i]), compute_dtype)
        wp = wp.at[:din, :dout].set(w.astype(compute_dtype))
        padded_ws.append(wp)
        bias_mat = bias_mat.at[i, :dout].set(b.astype(jnp.float32))

    # Batch tiling: big tiles amortize the ~0.35 us/step grid overhead; keep
    # >= 2 grid steps (when batch allows) so the "parallel" axis can shard
    # across v7x's two TensorCores.
    if batch < 256:
        tile_b = batch
    else:
        tile_b = min(4096, _round_up(pl.cdiv(batch, 2), 8))
    grid = (pl.cdiv(batch, tile_b),)

    in_specs = [pl.BlockSpec((tile_b, context_dim), lambda i: (i, 0))]
    for i in range(num_layers):
        # Weights pinned: same block every step -> fetched once, VMEM resident.
        in_specs.append(
            pl.BlockSpec((din_padded[i], dout_padded[i]), lambda i_: (0, 0)))
    in_specs.append(pl.BlockSpec((num_layers, dmax), lambda i: (0, 0)))

    out_spec = pl.BlockSpec((tile_b, slab_w), lambda i: (i, 0))
    out_shape = jax.ShapeDtypeStruct((batch, slab_w), out_dtype)

    itemsize = jnp.dtype(out_dtype).itemsize
    param_bytes = (sum(int(w.size) * w.dtype.itemsize for w in padded_ws)
                   + int(bias_mat.size) * 4)
    step_io_bytes = (tile_b * context_dim * jnp.dtype(context.dtype).itemsize
                     + tile_b * slab_w * itemsize)
    # Double-buffered tiles + (conservatively doubled) pinned params + slack;
    # floor at 32 MiB, cap at 48 MiB (fits v7x's 64 MiB physical VMEM).
    vmem_limit = min(max(2 * step_io_bytes + 2 * param_bytes + (4 << 20),
                         32 << 20), 48 << 20)

    flops = 2 * batch * sum(din_padded[i] * dout_padded[i]
                            for i in range(num_layers))
    bytes_accessed = (int(context.size) * context.dtype.itemsize + param_bytes
                      + batch * slab_w * itemsize)

    kernel = functools.partial(
        _fused_mlp_kernel, num_layers=num_layers, dout_padded=dout_padded,
        hidden_width=hp, compute_dtype=compute_dtype)

    slab = pl.pallas_call(
        kernel,
        out_shape=out_shape,
        grid=grid,
        in_specs=in_specs,
        out_specs=out_spec,
        compiler_params=pltpu.CompilerParams(
            dimension_semantics=("parallel",),
            vmem_limit_bytes=int(vmem_limit)),
        cost_estimate=pl.CostEstimate(
            flops=int(flops), transcendentals=0,
            bytes_accessed=int(bytes_accessed)),
    )(context, *padded_ws, bias_mat)

    return dict(x=slab[:, :last_hidden],
                pred_rewards=slab[:, hp:hp + n_actions])


def init_params(key, context_dim, hidden_dims, n_actions, dtype=jnp.float32):
    """Deterministic init matching the nn.Linear layer shapes.

    Uses uniform(-1/sqrt(fan_in), 1/sqrt(fan_in)); synthetic weights, not a
    checkpoint (PyTorch's kaiming_uniform_ weight init differs, bias matches).
    """
    dims = [context_dim, *hidden_dims, n_actions]
    params = []
    for i in range(len(dims) - 1):
        key, kw, kb = jax.random.split(key, 3)
        fan_in, fan_out = dims[i], dims[i + 1]
        bound = 1.0 / jnp.sqrt(jnp.asarray(fan_in, dtype))
        w = jax.random.uniform(kw, (fan_in, fan_out), dtype, -bound, bound)
        b = jax.random.uniform(kb, (fan_out,), dtype, -bound, bound)
        params.append((w, b))
    return params


if __name__ == "__main__":
    # Small shapes consistent with the module: context (batch, context_dim).
    batch = 8
    context_dim = 32
    hidden_dims = [64, 32]
    n_actions = 8

    key = jax.random.PRNGKey(0)
    k_ctx, k_params = jax.random.split(key)
    context = jax.random.normal(k_ctx, (batch, context_dim), dtype=jnp.float32)
    params = init_params(k_params, context_dim, hidden_dims, n_actions)

    # pallas_min_batch=0 -> always exercise the fused kernel here (for batch=8
    # a plain XLA dot chain would otherwise win on fixed cost).
    out = rms_neural_model_forward(context, params, pallas_min_batch=0)
    jax.block_until_ready(out)

    assert out["x"].shape == (batch, hidden_dims[-1])
    assert out["pred_rewards"].shape == (batch, n_actions)

    ref = _reference_forward(context, params)
    assert jnp.allclose(out["x"], ref["x"], rtol=1e-3, atol=1e-3)
    assert jnp.allclose(out["pred_rewards"], ref["pred_rewards"],
                        rtol=1e-3, atol=1e-3)

    print("KERNEL_OK")
</pallas_src>

<mosaic_0001>
module attributes {stable_mosaic.version = 11 : i64} {
  func.func @_fused_mlp_kernel(%arg0: i32, %arg1: memref<8x32xf32, #tpu.memory_space<vmem>>, %arg2: memref<32x128xf32, #tpu.memory_space<vmem>>, %arg3: memref<128x128xf32, #tpu.memory_space<vmem>>, %arg4: memref<128x128xf32, #tpu.memory_space<vmem>>, %arg5: memref<3x128xf32, #tpu.memory_space<vmem>>, %arg6: memref<8x256xf32, #tpu.memory_space<vmem>>) attributes {dimension_semantics = [#tpu.dimension_semantics<parallel>], iteration_bounds = array<i64: 1>, scalar_prefetch = 0 : i64, scratch_operands = 0 : i64, tpu.core_type = #tpu.core_type<tc>, window_params = [{transform_indices = @transform_0, window_bounds = array<i64: 8, 32>}, {pipeline_mode = #tpu.pipeline_mode<synchronous>, transform_indices = @transform_1, window_bounds = array<i64: 32, 128>}, {pipeline_mode = #tpu.pipeline_mode<synchronous>, transform_indices = @transform_2, window_bounds = array<i64: 128, 128>}, {pipeline_mode = #tpu.pipeline_mode<synchronous>, transform_indices = @transform_3, window_bounds = array<i64: 128, 128>}, {pipeline_mode = #tpu.pipeline_mode<synchronous>, transform_indices = @transform_4, window_bounds = array<i64: 3, 128>}, {transform_indices = @transform_5, window_bounds = array<i64: 8, 256>}]} {
    %c0 = arith.constant 0 : index
    %c0_0 = arith.constant 0 : index
    %0 = vector.load %arg1[%c0, %c0_0] : memref<8x32xf32, #tpu.memory_space<vmem>>, vector<8x32xf32>
    %c0_1 = arith.constant 0 : index
    %c0_2 = arith.constant 0 : index
    %1 = vector.load %arg2[%c0_1, %c0_2] : memref<32x128xf32, #tpu.memory_space<vmem>>, vector<32x128xf32>
    %cst = arith.constant dense<0.000000e+00> : vector<8x128xf32>
    %2 = tpu.matmul %0, %1, %cst {dimension_numbers = #tpu.dot_dimension_numbers<[1], [0], [0], [1], [0, 0, 1, 1], [], []>} : vector<8x32xf32>, vector<32x128xf32>, vector<8x128xf32> -> vector<8x128xf32>
    %c0_3 = arith.constant 0 : index
    %c0_4 = arith.constant 0 : index
    %3 = vector.load %arg5[%c0_3, %c0_4] : memref<3x128xf32, #tpu.memory_space<vmem>>, vector<1x128xf32>
    %4 = vector.broadcast %3 : vector<1x128xf32> to vector<8x128xf32>
    %5 = arith.addf %2, %4 : vector<8x128xf32>
    %cst_5 = arith.constant 0.000000e+00 : f32
    %6 = vector.broadcast %cst_5 : f32 to vector<8x128xf32>
    %7 = arith.maximumf %5, %6 : vector<8x128xf32>
    %c0_6 = arith.constant 0 : index
    %c0_7 = arith.constant 0 : index
    %8 = vector.load %arg3[%c0_6, %c0_7] : memref<128x128xf32, #tpu.memory_space<vmem>>, vector<128x128xf32>
    %cst_8 = arith.constant dense<0.000000e+00> : vector<8x128xf32>
    %9 = tpu.matmul %7, %8, %cst_8 {dimension_numbers = #tpu.dot_dimension_numbers<[1], [0], [0], [1], [0, 0, 1, 1], [], []>} : vector<8x128xf32>, vector<128x128xf32>, vector<8x128xf32> -> vector<8x128xf32>
    %c1 = arith.constant 1 : index
    %c0_9 = arith.constant 0 : index
    %10 = vector.load %arg5[%c1, %c0_9] : memref<3x128xf32, #tpu.memory_space<vmem>>, vector<1x128xf32>
    %11 = vector.broadcast %10 : vector<1x128xf32> to vector<8x128xf32>
    %12 = arith.addf %9, %11 : vector<8x128xf32>
    %cst_10 = arith.constant 0.000000e+00 : f32
    %13 = vector.broadcast %cst_10 : f32 to vector<8x128xf32>
    %14 = arith.maximumf %12, %13 : vector<8x128xf32>
    %c0_11 = arith.constant 0 : index
    %c0_12 = arith.constant 0 : index
    %15 = vector.load %arg6[%c0_11, %c0_12] : memref<8x256xf32, #tpu.memory_space<vmem>>, vector<8x128xf32>
    tpu.vector_store %arg6[%c0_11, %c0_12], %14 {strides = array<i32>} : memref<8x256xf32, #tpu.memory_space<vmem>>, vector<8x128xf32>,
    %c0_13 = arith.constant 0 : index
    %c0_14 = arith.constant 0 : index
    %16 = vector.load %arg4[%c0_13, %c0_14] : memref<128x128xf32, #tpu.memory_space<vmem>>, vector<128x128xf32>
    %cst_15 = arith.constant dense<0.000000e+00> : vector<8x128xf32>
    %17 = tpu.matmul %14, %16, %cst_15 {dimension_numbers = #tpu.dot_dimension_numbers<[1], [0], [0], [1], [0, 0, 1, 1], [], []>} : vector<8x128xf32>, vector<128x128xf32>, vector<8x128xf32> -> vector<8x128xf32>
    %c2 = arith.constant 2 : index
    %c0_16 = arith.constant 0 : index
    %18 = vector.load %arg5[%c2, %c0_16] : memref<3x128xf32, #tpu.memory_space<vmem>>, vector<1x128xf32>
    %19 = vector.broadcast %18 : vector<1x128xf32> to vector<8x128xf32>
    %20 = arith.addf %17, %19 : vector<8x128xf32>
    %c0_17 = arith.constant 0 : index
    %c128 = arith.constant 128 : index
    %21 = vector.load %arg6[%c0_17, %c128] : memref<8x256xf32, #tpu.memory_space<vmem>>, vector<8x128xf32>
    tpu.vector_store %arg6[%c0_17, %c128], %20 {strides = array<i32>} : memref<8x256xf32, #tpu.memory_space<vmem>>, vector<8x128xf32>,
    return
  }
  func.func @transform_0(%arg0: i32) -> (i32, i32) {
    %c0_i32 = arith.constant 0 : i32
    %c0_i32_0 = arith.constant 0 : i32
    return %arg0, %c0_i32 : i32, i32
  }
  func.func @transform_1(%arg0: i32) -> (i32, i32) {
    %c0_i32 = arith.constant 0 : i32
    %c0_i32_0 = arith.constant 0 : i32
    %c0_i32_1 = arith.constant 0 : i32
    return %c0_i32, %c0_i32_0 : i32, i32
  }
  func.func @transform_2(%arg0: i32) -> (i32, i32) {
    %c0_i32 = arith.constant 0 : i32
    %c0_i32_0 = arith.constant 0 : i32
    %c0_i32_1 = arith.constant 0 : i32
    return %c0_i32, %c0_i32_0 : i32, i32
  }
  func.func @transform_3(%arg0: i32) -> (i32, i32) {
    %c0_i32 = arith.constant 0 : i32
    %c0_i32_0 = arith.constant 0 : i32
    %c0_i32_1 = arith.constant 0 : i32
    return %c0_i32, %c0_i32_0 : i32, i32
  }
  func.func @transform_4(%arg0: i32) -> (i32, i32) {
    %c0_i32 = arith.constant 0 : i32
    %c0_i32_0 = arith.constant 0 : i32
    %c0_i32_1 = arith.constant 0 : i32
    return %c0_i32, %c0_i32_0 : i32, i32
  }
  func.func @transform_5(%arg0: i32) -> (i32, i32) {
    %c0_i32 = arith.constant 0 : i32
    %c0_i32_0 = arith.constant 0 : i32
    return %arg0, %c0_i32 : i32, i32
  }
}

</mosaic_0001>

<bundles_post_ra>
// kernel: tpu_custom_call.1
= control target key start
LH: loop header
LB: loop body
LE: loop exit
PB: predicated region body
PF: predicated region fallthrough
CT: control target
= control target key end

     0   :  { %10 = vsyncpa [#allocation3], 0  ;;  %s806_s0 = inlined_call_operand.hbm [shape: f32[8,32], index: 0, kind: input, shape index: {}]   ;;  %s807_s1 = inlined_call_operand.hbm [shape: f32[32,128], index: 1, kind: input, shape index: {}]   ;;  %s808_s2 = inlined_call_operand.hbm [shape: f32[128,128], index: 2, kind: input, shape index: {}]   ;;  %s809_s3 = inlined_call_operand.hbm [shape: f32[128,128], index: 3, kind: input, shape index: {}]   ;;  %s810_s4 = inlined_call_operand.vmem [shape: f32[3,128], index: 4, kind: input, shape index: {}]   ;;  %s811_s5 = inlined_call_operand.hbm [shape: f32[8,256], index: 5, kind: output, shape index: {}]  }
   0x1   :  { %11 = vsyncpa [#allocation6], 0 }
   0x2   :  { %12 = vsyncpa [#allocation9], 0 }
   0x3   :  { %13 = vsyncpa [#allocation4], 0  ;;  %s667_s18 = smov [#allocation5]   ;;  %s549_s22 = scalar_lea.hbm %s807_s1, 512 }
   0x4   :  { %s29_s19 = sshll.u32 %s667_s18, 4  ;;  %p550_p0 = scmp.ne.s32.totalorder %s807_s1, %s549_s22  ;;  %s30_s19 = int_to_ptr.vmem [resolvable:$true] %s29_s19 }
   0x5   :  { %p553_p1 = scmp.lt.u32.totalorder %s549_s22, %s807_s1 }
   0x7   :  { %p555_p2 = pnand %p553_p1, %p550_p0 }
   0x9   :  { %558 = shalt.err (!%p555_p2)
}
   0xa   :  { %s559_s27 = scalar_lea.vmem %s30_s19, 512  ;;  %p564_p4 = scmp.lt.s32.totalorder %s30_s19, %s30_s19 }
   0xb   :  { %p560_p3 = scmp.ne.s32.totalorder %s30_s19, %s559_s27  ;;  %p565_p5 = scmp.lt.s32.totalorder %s559_s27, %s559_s27 }
   0xd   :  { %p566_p6 = por %p565_p5, %p564_p4 }
   0xf   :  { %p567_p7 = pnand %p566_p6, %p560_p3 }
  0x11   :  { %570 = shalt.err (!%p567_p7)
}
  0x12   :  { %s668_s28 = smov 128   ;;  %s669_s29 = smov 8  }
  0x13   :  { %35 = dma.hbm_to_vmem [thread:$0]  %s807_s1, 512, %s30_s19, [#allocation6], %s668_s28, %s668_s28, %s669_s29  }
  0x14   :  { %s670_s7 = smov [#allocation2]   ;;  %s671_s9 = smov [#allocation7]  }
  0x15   :  { %s20_s8 = sshll.u32 %s670_s7, 4  ;;  %s41_s10 = sshll.u32 %s671_s9, 4  ;;  %s21_s8 = int_to_ptr.vmem [resolvable:$true] %s20_s8  ;;  %s42_s10 = int_to_ptr.vmem [resolvable:$true] %s41_s10 }
  0x16   :  { %s571_s13 = scalar_lea.hbm %s806_s0, 128 }
  0x17   :  { %p572_p8 = scmp.ne.s32.totalorder %s806_s0, %s571_s13  ;;  %p575_p9 = scmp.lt.u32.totalorder %s571_s13, %s806_s0 }
  0x19   :  { %p577_p10 = pnand %p575_p9, %p572_p8 }
  0x1b   :  { %580 = shalt.err (!%p577_p10)
}
  0x1c   :  { %s581_s1 = scalar_lea.vmem %s21_s8, 128  ;;  %p586_p12 = scmp.lt.s32.totalorder %s21_s8, %s21_s8 }
  0x1d   :  { %p582_p11 = scmp.ne.s32.totalorder %s21_s8, %s581_s1  ;;  %p587_p13 = scmp.lt.s32.totalorder %s581_s1, %s581_s1 }
  0x1f   :  { %p588_p0 = por %p587_p13, %p586_p12 }
  0x21   :  { %p589_p1 = pnand %p588_p0, %p582_p11 }
  0x23   :  { %592 = shalt.err (!%p589_p1)
}
  0x24   :  { %23 = dma.hbm_to_vmem [thread:$0]  %s806_s0, 128, %s21_s8, [#allocation3]  }
  0x25   :  { %s593_s22 = scalar_lea.hbm %s808_s2, 2048 }
  0x26   :  { %p594_p2 = scmp.ne.s32.totalorder %s808_s2, %s593_s22  ;;  %p597_p3 = scmp.lt.u32.totalorder %s593_s22, %s808_s2 }
  0x28   :  { %p599_p4 = pnand %p597_p3, %p594_p2 }
  0x2a   :  { %602 = shalt.err (!%p599_p4)
}
  0x2b   :  { %s603_s27 = scalar_lea.vmem %s42_s10, 2048  ;;  %p608_p6 = scmp.lt.s32.totalorder %s42_s10, %s42_s10 }
  0x2c   :  { %p604_p5 = scmp.ne.s32.totalorder %s42_s10, %s603_s27  ;;  %p609_p7 = scmp.lt.s32.totalorder %s603_s27, %s603_s27 }
  0x2e   :  { %p610_p8 = por %p609_p7, %p608_p6 }
  0x30   :  { %p611_p9 = pnand %p610_p8, %p604_p5 }
  0x32   :  { %614 = shalt.err (!%p611_p9)
}
  0x33   :  { %47 = dma.hbm_to_vmem [thread:$0]  %s808_s2, 2048, %s42_s10, [#allocation6], %s668_s28, %s668_s28, %s669_s29  }
  0x34   :  { %s672_s6 = smov [#allocation8]   ;;  %s615_s11 = scalar_lea.hbm %s809_s3, 2048 }
  0x35   :  { %s53_s7 = sshll.u32 %s672_s6, 4  ;;  %p616_p10 = scmp.ne.s32.totalorder %s809_s3, %s615_s11  ;;  %s54_s7 = int_to_ptr.vmem [resolvable:$true] %s53_s7 }
  0x36   :  { %p619_p11 = scmp.lt.u32.totalorder %s615_s11, %s809_s3 }
  0x38   :  { %p621_p12 = pnand %p619_p11, %p616_p10 }
  0x3a   :  { %624 = shalt.err (!%p621_p12)
}
  0x3b   :  { %s625_s16 = scalar_lea.vmem %s54_s7, 2048  ;;  %p630_p0 = scmp.lt.s32.totalorder %s54_s7, %s54_s7 }
  0x3c   :  { %p626_p13 = scmp.ne.s32.totalorder %s54_s7, %s625_s16  ;;  %p631_p1 = scmp.lt.s32.totalorder %s625_s16, %s625_s16 }
  0x3e   :  { %p632_p2 = por %p631_p1, %p630_p0 }
  0x40   :  { %p633_p3 = pnand %p632_p2, %p626_p13 }
  0x42   :  { %636 = shalt.err (!%p633_p3)
}
  0x43   :  { %59 = dma.hbm_to_vmem [thread:$0]  %s809_s3, 2048, %s54_s7, [#allocation9], %s668_s28, %s668_s28, %s669_s29  }
  0x44   :  { %659 = dma.done.wait [#allocation3], 128  }
  0x45   :  { %660 = vsyncadd [#allocation3], 4294967168 }
  0x46   :  { %661 = dma.done.wait [#allocation6], 2560  }
  0x47   :  { %662 = vsyncadd [#allocation6], 4294964736 }
  0x48   :  { %663 = dma.done.wait [#allocation9], 2048  }
  0x49   :  { %664 = vsyncadd [#allocation9], 4294965248  ;;  %v673_v0 = vmov 0.0|0.0   ;;  %vm674_vm0 = vmmov 0   ;;  %v675_v1 = vmov 0.0   ;;  %v75_v2 = vld [vmem:[#allocation5] sm:$0xff] }
  0x4a   :  { %485 = vmatprep.subr.bf16.mxu0 %v673_v0  ;;  %412 = vmatprep.mubr.msk.f32.mxu0 %vm674_vm0, %v675_v1  ;;  %v76_v3 = vld [vmem:[#allocation5 + $0x8] sm:$0xff]  ;;  %v77_v4 = vld [vmem:[#allocation5 + $0x10] sm:$0xff]  ;;  %v78_v6 = vld [vmem:[#allocation5 + $0x18] sm:$0xff]  ;;  %vm84_vm1 = vcmask 261120   ;;  %s676_s19 = smov [#allocation10]  }
  0x4b   :  { %491 = vmatprep.subr.bf16.mxu1 %v673_v0  ;;  %447 = vmatprep.mubr.msk.f32.mxu1 %vm674_vm0, %v675_v1  ;;  %v486_v5 = vpack.c.bf16 %v76_v3, %v75_v2  ;;  %v159_v7 = vld [vmem:[#allocation7] sm:$0xff]  ;;  %v160_v8 = vld [vmem:[#allocation7 + $0x8] sm:$0xff]  ;;  %v161_v9 = vld [vmem:[#allocation7 + $0x10] sm:$0xff]  ;;  %v489_v11 = vpack.c.bf16 %v78_v6, %v77_v4  ;;  %s350_s20 = sshll.u32 %s676_s19, 4  ;;  %s351_s20 = int_to_ptr.vmem [resolvable:$true] %s350_s20 }
  0x4c   :  { %v162_v10 = vld [vmem:[#allocation7 + $0x18] sm:$0xff]  ;;  %v492_v12 = vpack.c.bf16 %v160_v8, %v159_v7  ;;  %v163_v14 = vld [vmem:[#allocation7 + $0x20] sm:$0xff]  ;;  %v164_v15 = vld [vmem:[#allocation7 + $0x28] sm:$0xff]  ;;  %s637_s21 = scalar_lea.vmem %s351_s20, 256  ;;  %p642_p5 = scmp.lt.s32.totalorder %s351_s20, %s351_s20 }
  0x4d   :  { %487 = vmatpush3.bf16.msra.mxu0 %v486_v5  ;;  %v495_v13 = vpack.c.bf16 %v162_v10, %v161_v9  ;;  %v74_v16 = vld [vmem:[#allocation2] sm:$0xff]  ;;  %v498_v17 = vpack.c.bf16 %v164_v15, %v163_v14  ;;  %v165_v18 = vld [vmem:[#allocation7 + $0x30] sm:$0xff]  ;;  %v167_v21 = vld [vmem:[#allocation7 + $0x40] sm:$0xff]  ;;  %p638_p4 = scmp.ne.s32.totalorder %s351_s20, %s637_s21  ;;  %p643_p6 = scmp.lt.s32.totalorder %s637_s21, %s637_s21 }
  0x4e   :  { %488 = vmatprep.subr.bf16.mxu0 %v673_v0  ;;  %493 = vmatpush3.bf16.msra.mxu1 %v492_v12  ;;  %v166_v19 = vld [vmem:[#allocation7 + $0x38] sm:$0xff]  ;;  %v168_v22 = vld [vmem:[#allocation7 + $0x48] sm:$0xff]  ;;  %v169_v24 = vld [vmem:[#allocation7 + $0x50] sm:$0xff] }
  0x4f   :  { %494 = vmatprep.subr.bf16.mxu1 %v673_v0  ;;  %v501_v20 = vpack.c.bf16 %v166_v19, %v165_v18  ;;  %v504_v23 = vpack.c.bf16 %v168_v22, %v167_v21  ;;  %v170_v25 = vld [vmem:[#allocation7 + $0x58] sm:$0xff]  ;;  %v171_v27 = vld [vmem:[#allocation7 + $0x60] sm:$0xff]  ;;  %v172_v28 = vld [vmem:[#allocation7 + $0x68] sm:$0xff]  ;;  %p644_p7 = por %p643_p6, %p642_p5 }
  0x50   :  { %v507_v26 = vpack.c.bf16 %v170_v25, %v169_v24  ;;  %v510_v29 = vpack.c.bf16 %v172_v28, %v171_v27  ;;  %v173_v30 = vld [vmem:[#allocation7 + $0x70] sm:$0xff]  ;;  %v174_v31 = vld [vmem:[#allocation7 + $0x78] sm:$0xff]  ;;  %v252_v33 = vld [vmem:[#allocation8] sm:$0xff] }
  0x51   :  { %490 = vmatpush3.bf16.msra.mxu0 %v489_v11  ;;  %v513_v32 = vpack.c.bf16 %v174_v31, %v173_v30  ;;  %v253_v34 = vld [vmem:[#allocation8 + $0x8] sm:$0xff]  ;;  %v254_v35 = vld [vmem:[#allocation8 + $0x10] sm:$0xff]  ;;  %v255_v37 = vld [vmem:[#allocation8 + $0x18] sm:$0xff]  ;;  %p645_p8 = pnand %p644_p7, %p638_p4 }
  0x52   :  { %515 = vmatprep.subr.bf16.mxu0 %v673_v0  ;;  %496 = vmatpush3.bf16.msra.mxu1 %v495_v13  ;;  %v516_v36 = vpack.c.bf16 %v253_v34, %v252_v33  ;;  %v519_v38 = vpack.c.bf16 %v255_v37, %v254_v35  ;;  %v256_v39 = vld [vmem:[#allocation8 + $0x20] sm:$0xff]  ;;  %v257_v40 = vld [vmem:[#allocation8 + $0x28] sm:$0xff]  ;;  %v258_v42 = vld [vmem:[#allocation8 + $0x30] sm:$0xff] }
  0x53   :  { %497 = vmatprep.subr.bf16.mxu1 %v673_v0  ;;  %v522_v41 = vpack.c.bf16 %v257_v40, %v256_v39  ;;  %v259_v43 = vld [vmem:[#allocation8 + $0x38] sm:$0xff]  ;;  %v260_v45 = vld [vmem:[#allocation8 + $0x40] sm:$0xff]  ;;  %v261_v46 = vld [vmem:[#allocation8 + $0x48] sm:$0xff] }
  0x54   :  { %413 = vmatmul.mubr.msk.f32.vlgmr.msra.gmra.mrb[0].mxu0 %vm84_vm1, %v74_v16  ;;  %v525_v44 = vpack.c.bf16 %v259_v43, %v258_v42  ;;  %v528_v47 = vpack.c.bf16 %v261_v46, %v260_v45  ;;  %v262_v48 = vld [vmem:[#allocation8 + $0x50] sm:$0xff]  ;;  %v263_v49 = vld [vmem:[#allocation8 + $0x58] sm:$0xff]  ;;  %v264_v51 = vld [vmem:[#allocation8 + $0x60] sm:$0xff] }
  0x55   :  { %482 = vmatprep.mubr.msk.f32.mxu0 %vm674_vm0, %v675_v1  ;;  %517 = vmatpush3.bf16.msra.mxu0 %v516_v36  ;;  %v531_v50 = vpack.c.bf16 %v263_v49, %v262_v48  ;;  %v265_v52 = vld [vmem:[#allocation8 + $0x68] sm:$0xff]  ;;  %v361_v54 = vld [vmem:[%s810_s4] ss:$0 sm:$0xff]  ;;  %v266_v59 = vld [vmem:[#allocation8 + $0x70] sm:$0xff] }
  0x56   :  { %499 = vmatpush3.bf16.msra.mxu1 %v498_v17  ;;  %518 = vmatprep.subr.bf16.mxu0 %v673_v0  ;;  %v534_v53 = vpack.c.bf16 %v265_v52, %v264_v51  ;;  %v267_v60 = vld [vmem:[#allocation8 + $0x78] sm:$0xff] }
  0x57   :  { %500 = vmatprep.subr.bf16.mxu1 %v673_v0  ;;  %v537_v61 = vpack.c.bf16 %v267_v60, %v266_v59  ;;  %v363_v62 = vld [vmem:[%s810_s4 + $0x1] ss:$0 sm:$0xff]  ;;  %v364_v3 = vld [vmem:[%s810_s4 + $0x2] ss:$0 sm:$0xff] }
  0x59   :  { %520 = vmatpush3.bf16.msra.mxu0 %v519_v38 }
  0x5a   :  { %502 = vmatpush3.bf16.msra.mxu1 %v501_v20  ;;  %521 = vmatprep.subr.bf16.mxu0 %v673_v0 }
  0x5b   :  { %503 = vmatprep.subr.bf16.mxu1 %v673_v0 }
  0x5d   :  { %523 = vmatpush3.bf16.msra.mxu0 %v522_v41 }
  0x5e   :  { %505 = vmatpush3.bf16.msra.mxu1 %v504_v23  ;;  %524 = vmatprep.subr.bf16.mxu0 %v673_v0 }
  0x5f   :  { %506 = vmatprep.subr.bf16.mxu1 %v673_v0 }
  0x61   :  { %526 = vmatpush3.bf16.msra.mxu0 %v525_v44 }
  0x62   :  { %508 = vmatpush3.bf16.msra.mxu1 %v507_v26  ;;  %527 = vmatprep.subr.bf16.mxu0 %v673_v0 }
  0x63   :  { %509 = vmatprep.subr.bf16.mxu1 %v673_v0 }
  0x65   :  { %529 = vmatpush3.bf16.msra.mxu0 %v528_v47 }
  0x66   :  { %511 = vmatpush3.bf16.msra.mxu1 %v510_v29  ;;  %530 = vmatprep.subr.bf16.mxu0 %v673_v0 }
  0x67   :  { %512 = vmatprep.subr.bf16.mxu1 %v673_v0 }
  0x69   :  { %532 = vmatpush3.bf16.msra.mxu0 %v531_v50 }
  0x6a   :  { %514 = vmatpush3.bf16.msra.mxu1 %v513_v32  ;;  %533 = vmatprep.subr.bf16.mxu0 %v673_v0 }
  0x6d   :  { %535 = vmatpush3.bf16.msra.mxu0 %v534_v53 }
  0x6e   :  { %536 = vmatprep.subr.bf16.mxu0 %v673_v0 }
  0x71   :  { %538 = vmatpush3.bf16.msra.mxu0 %v537_v61 }
 0x127   :  { %v154_v55 = vpop.f32.mrb[0].mxu0 }
 0x128   :  { %v155_v56 = vadd.f32 %v361_v54, %v154_v55  ;;  %v414_v57 = vpop.f32.mrb[1].mxu0 }
 0x12a   :  { %v158_v58 = vmax.f32 %v155_v56, 0.0 }
 0x12c   :  { %448 = vmatmul.mubr.f32.vlgmr.msra.gmra.mrb[0].mxu1 %v158_v58 }
 0x1ff   :  { %v246_v63 = vpop.f32.mrb[0].mxu1 }
 0x200   :  { %v247_v1 = vadd.f32 %v363_v62, %v246_v63  ;;  %v449_v0 = vpop.f32.mrb[1].mxu1 }
 0x202   :  { %v250_v2 = vmax.f32 %v247_v1, 0.0 }
 0x204   :  { %251 = vst [vmem:[#allocation10] sm:$0xff] %v250_v2  ;;  %483 = vmatmul.mubr.f32.vlgmr.msra.gmra.mrb[2].mxu0 %v250_v2 }
 0x2d7   :  { %v339_v4 = vpop.f32.mrb[2].mxu0 }
 0x2d8   :  { %v340_v5 = vadd.f32 %v364_v3, %v339_v4  ;;  %v484_v6 = vpop.f32.mrb[3].mxu0 }
 0x2da   :  { %343 = vst [vmem:[#allocation10 + $0x8] sm:$0xff] %v340_v5 }
 0x2db   :  { %648 = shalt.err (!%p645_p8)
}
 0x2dc   :  { %s649_s24 = scalar_lea.hbm %s811_s5, 256 }
 0x2dd   :  { %p650_p9 = scmp.ne.s32.totalorder %s811_s5, %s649_s24  ;;  %p653_p10 = scmp.lt.u32.totalorder %s649_s24, %s811_s5 }
 0x2df   :  { %p655_p11 = pnand %p653_p10, %p650_p9 }
 0x2e1   :  { %658 = shalt.err (!%p655_p11)
}
 0x2e2   :  { %353 = dma.vmem_to_hbm [thread:$0]  %s351_s20, 256, %s811_s5, [#allocation4]  }
 0x2e3   :  { %665 = dma.done.wait [#allocation4], 256  }
 0x2e4   :  { %666 = vsyncadd [#allocation4], 4294967040 }
 0x2e5   :  { %357 = vsyncpa [#allocation3], 1 }
 0x2e6   :  { %358 = vsyncpa [#allocation6], 1 }
 0x2e7   :  { %359 = vsyncpa [#allocation9], 1 }
 0x2e8   :  { %360 = vsyncpa [#allocation4], 1 }

</bundles_post_ra>
